<compile_context>
chip_gen: v7x
topology: tpu7x:2x2x1
jax: 0.10.0
libtpu: 0.0.40
codegen_flags: <defaults>
</compile_context>

<pallas_src>
import functools

import jax
import jax.numpy as jnp
from jax.experimental import pallas as pl
from jax.experimental.pallas import tpu as pltpu


_IN = 4        # fc1 in
_H1 = 128      # fc1 out
_H2 = 64       # fc2 out
_OUT = 100     # fc3 out


def _round_up(n, m):
    return ((n + m - 1) // m) * m


def _mlp_kernel(x_ref, w1_ref, b1_ref, w2_ref, b2_ref, w3_ref, b3_ref, o_ref):
    # x tile: [TB, 4] f32. All matmuls stay f32 with f32 accumulate -- the
    # kernel is HBM-bound on every generation, so MXU-side cost of f32 (and of
    # the K=4 contraction waste in fc1) is irrelevant; accuracy is the win.
    x = x_ref[...]

    # fc1 + ReLU -> [TB, 128]
    h1 = jnp.dot(x, w1_ref[...], preferred_element_type=jnp.float32)
    h1 = jnp.maximum(h1 + b1_ref[...], 0.0)

    # Dropout(0.2): identity in inference / eval mode.
    # TODO(synk): training-mode dropout (pltpu.prng_seed + prng_random_bits
    # mask with 1/(1-p) scaling) not emitted.

    # fc2 + ReLU -> [TB, 64]
    h2 = jnp.dot(h1, w2_ref[...], preferred_element_type=jnp.float32)
    h2 = jnp.maximum(h2 + b2_ref[...], 0.0)

    # fc3 (no activation) -> [TB, 100], stored directly (masked vst on lanes
    # 100..127; cheaper than padding to 128 f32 lanes in HBM + slicing later).
    h3 = jnp.dot(h2, w3_ref[...], preferred_element_type=jnp.float32)
    o_ref[...] = h3 + b3_ref[...]


def _default_tile_rows(B):
    if B <= 1024:
        # Single tile for small batches.
        return _round_up(B, 8)
    # Large batches: 2048-4096-row tiles (hundreds of KiB to MiB of DMA per
    # grid step amortizes the ~0.35 us per-step overhead), while keeping
    # >= 2 grid steps so the batch axis shards across v7x's two TensorCores.
    return min(4096, _round_up(pl.cdiv(B, 2), 256))


@functools.partial(jax.jit, static_argnames=("tile_rows",))
def regression_nn_forward(x, params, *, tile_rows=None):
    """x: [B, 4] float32 ; params: dict from init_params() (all f32)."""
    B, F = x.shape
    assert F == _IN, F

    TB = _default_tile_rows(B) if tile_rows is None else tile_rows
    grid = (pl.cdiv(B, TB),)

    def resident(shape):
        # Constant block index -> copied into VMEM once, never re-DMA'd.
        return pl.BlockSpec(shape, lambda i: (0, 0))

    flops = 2 * B * (_IN * _H1 + _H1 * _H2 + _H2 * _OUT)
    bytes_accessed = (
        B * _IN * 4                                      # x in  (f32)
        + B * _OUT * 4                                   # out   (f32, unpadded)
        + (_IN * _H1 + _H1 * _H2 + _H2 * _OUT) * 4       # f32 weights
        + (_H1 + _H2 + _OUT) * 4                         # f32 biases
    )

    out = pl.pallas_call(
        _mlp_kernel,
        out_shape=jax.ShapeDtypeStruct((B, _OUT), jnp.float32),
        grid=grid,
        in_specs=[
            pl.BlockSpec((TB, _IN), lambda i: (i, 0)),   # x: streamed per tile
            resident((_IN, _H1)),                        # w1
            resident((1, _H1)),                          # b1
            resident((_H1, _H2)),                        # w2
            resident((1, _H2)),                          # b2
            resident((_H2, _OUT)),                       # w3
            resident((1, _OUT)),                         # b3
        ],
        out_specs=pl.BlockSpec((TB, _OUT), lambda i: (i, 0)),
        compiler_params=pltpu.CompilerParams(
            dimension_semantics=("parallel",),           # v7x megacore over batch
            vmem_limit_bytes=32 * 1024 * 1024,           # v7x-safe scoped budget
        ),
        cost_estimate=pl.CostEstimate(
            flops=flops, transcendentals=0, bytes_accessed=bytes_accessed),
    )(x,
      params["w1"], params["b1"],
      params["w2"], params["b2"],
      params["w3"], params["b3"])

    return out


def init_params(key):
    """Deterministic init mimicking nn.Linear's U(-1/sqrt(fan_in), 1/sqrt(fan_in)).

    Weights stored as [in_features, out_features] so forward is x @ W + b
    (equivalent to PyTorch's x @ W.T with W: [out, in]). Everything stays f32."""
    def linear(key, fan_in, fan_out):
        kw, kb = jax.random.split(key)
        bound = 1.0 / jnp.sqrt(jnp.float32(fan_in))
        w = jax.random.uniform(kw, (fan_in, fan_out), jnp.float32, -bound, bound)
        b = jax.random.uniform(kb, (1, fan_out), jnp.float32, -bound, bound)
        return w, b

    k1, k2, k3 = jax.random.split(key, 3)
    w1, b1 = linear(k1, _IN, _H1)
    w2, b2 = linear(k2, _H1, _H2)
    w3, b3 = linear(k3, _H2, _OUT)
    return {"w1": w1, "b1": b1, "w2": w2, "b2": b2, "w3": w3, "b3": b3}


def reference_forward_f32(x, params):
    """Pure-f32 JAX reference (original module semantics, eval mode)."""
    h1 = jnp.maximum(x @ params["w1"] + params["b1"], 0.0)
    h2 = jnp.maximum(h1 @ params["w2"] + params["b2"], 0.0)
    return h2 @ params["w3"] + params["b3"]


if __name__ == "__main__":
    key = jax.random.PRNGKey(0)
    kp, kx1, kx2 = jax.random.split(key, 3)

    params = init_params(kp)

    # --- Small-shape primary check: batch=8, in_features=4 ---------------
    B = 8
    x = jax.random.normal(kx1, (B, _IN), dtype=jnp.float32)
    out = jax.block_until_ready(regression_nn_forward(x, params))
    assert out.shape == (B, _OUT), out.shape
    ref = reference_forward_f32(x, params)
    assert jnp.allclose(out, ref, atol=2e-2, rtol=2e-2), (
        "mismatch vs f32 reference (B=8): max abs err "
        f"{float(jnp.max(jnp.abs(out - ref)))}")

    # --- Edge-block check: B not divisible by the tile (padded tail tile) --
    B2, TB2 = 1000, 512
    x2 = jax.random.normal(kx2, (B2, _IN), dtype=jnp.float32)
    out2 = jax.block_until_ready(regression_nn_forward(x2, params, tile_rows=TB2))
    assert out2.shape == (B2, _OUT), out2.shape
    ref2 = reference_forward_f32(x2, params)
    assert jnp.allclose(out2, ref2, atol=2e-2, rtol=2e-2), (
        "mismatch vs f32 reference (B=1000, tail tile): max abs err "
        f"{float(jnp.max(jnp.abs(out2 - ref2)))}")

    print("KERNEL_OK")
</pallas_src>

<mosaic_0001>
module attributes {stable_mosaic.version = 11 : i64} {
  func.func @_mlp_kernel(%arg0: i32, %arg1: memref<8x4xf32, #tpu.memory_space<vmem>>, %arg2: memref<4x128xf32, #tpu.memory_space<vmem>>, %arg3: memref<1x128xf32, #tpu.memory_space<vmem>>, %arg4: memref<128x64xf32, #tpu.memory_space<vmem>>, %arg5: memref<1x64xf32, #tpu.memory_space<vmem>>, %arg6: memref<64x100xf32, #tpu.memory_space<vmem>>, %arg7: memref<1x100xf32, #tpu.memory_space<vmem>>, %arg8: memref<8x100xf32, #tpu.memory_space<vmem>>) attributes {dimension_semantics = [#tpu.dimension_semantics<parallel>], iteration_bounds = array<i64: 1>, scalar_prefetch = 0 : i64, scratch_operands = 0 : i64, tpu.core_type = #tpu.core_type<tc>, window_params = [{transform_indices = @transform_0, window_bounds = array<i64: 8, 4>}, {pipeline_mode = #tpu.pipeline_mode<synchronous>, transform_indices = @transform_1, window_bounds = array<i64: 4, 128>}, {pipeline_mode = #tpu.pipeline_mode<synchronous>, transform_indices = @transform_2, window_bounds = array<i64: 1, 128>}, {pipeline_mode = #tpu.pipeline_mode<synchronous>, transform_indices = @transform_3, window_bounds = array<i64: 128, 64>}, {pipeline_mode = #tpu.pipeline_mode<synchronous>, transform_indices = @transform_4, window_bounds = array<i64: 1, 64>}, {pipeline_mode = #tpu.pipeline_mode<synchronous>, transform_indices = @transform_5, window_bounds = array<i64: 64, 100>}, {pipeline_mode = #tpu.pipeline_mode<synchronous>, transform_indices = @transform_6, window_bounds = array<i64: 1, 100>}, {transform_indices = @transform_7, window_bounds = array<i64: 8, 100>}]} {
    %c0 = arith.constant 0 : index
    %c0_0 = arith.constant 0 : index
    %0 = vector.load %arg1[%c0, %c0_0] : memref<8x4xf32, #tpu.memory_space<vmem>>, vector<8x4xf32>
    %c0_1 = arith.constant 0 : index
    %c0_2 = arith.constant 0 : index
    %1 = vector.load %arg2[%c0_1, %c0_2] : memref<4x128xf32, #tpu.memory_space<vmem>>, vector<4x128xf32>
    %cst = arith.constant dense<0.000000e+00> : vector<8x128xf32>
    %2 = tpu.matmul %0, %1, %cst {dimension_numbers = #tpu.dot_dimension_numbers<[1], [0], [0], [1], [0, 0, 1, 1], [], []>} : vector<8x4xf32>, vector<4x128xf32>, vector<8x128xf32> -> vector<8x128xf32>
    %c0_3 = arith.constant 0 : index
    %c0_4 = arith.constant 0 : index
    %3 = vector.load %arg3[%c0_3, %c0_4] : memref<1x128xf32, #tpu.memory_space<vmem>>, vector<1x128xf32>
    %4 = vector.broadcast %3 : vector<1x128xf32> to vector<8x128xf32>
    %5 = arith.addf %2, %4 : vector<8x128xf32>
    %cst_5 = arith.constant 0.000000e+00 : f32
    %6 = vector.broadcast %cst_5 : f32 to vector<8x128xf32>
    %7 = arith.maximumf %5, %6 : vector<8x128xf32>
    %c0_6 = arith.constant 0 : index
    %c0_7 = arith.constant 0 : index
    %8 = vector.load %arg4[%c0_6, %c0_7] : memref<128x64xf32, #tpu.memory_space<vmem>>, vector<128x64xf32>
    %cst_8 = arith.constant dense<0.000000e+00> : vector<8x64xf32>
    %9 = tpu.matmul %7, %8, %cst_8 {dimension_numbers = #tpu.dot_dimension_numbers<[1], [0], [0], [1], [0, 0, 1, 1], [], []>} : vector<8x128xf32>, vector<128x64xf32>, vector<8x64xf32> -> vector<8x64xf32>
    %c0_9 = arith.constant 0 : index
    %c0_10 = arith.constant 0 : index
    %10 = vector.load %arg5[%c0_9, %c0_10] : memref<1x64xf32, #tpu.memory_space<vmem>>, vector<1x64xf32>
    %11 = vector.broadcast %10 : vector<1x64xf32> to vector<8x64xf32>
    %12 = arith.addf %9, %11 : vector<8x64xf32>
    %cst_11 = arith.constant 0.000000e+00 : f32
    %13 = vector.broadcast %cst_11 : f32 to vector<8x64xf32>
    %14 = arith.maximumf %12, %13 : vector<8x64xf32>
    %c0_12 = arith.constant 0 : index
    %c0_13 = arith.constant 0 : index
    %15 = vector.load %arg6[%c0_12, %c0_13] : memref<64x100xf32, #tpu.memory_space<vmem>>, vector<64x100xf32>
    %cst_14 = arith.constant dense<0.000000e+00> : vector<8x100xf32>
    %16 = tpu.matmul %14, %15, %cst_14 {dimension_numbers = #tpu.dot_dimension_numbers<[1], [0], [0], [1], [0, 0, 1, 1], [], []>} : vector<8x64xf32>, vector<64x100xf32>, vector<8x100xf32> -> vector<8x100xf32>
    %c0_15 = arith.constant 0 : index
    %c0_16 = arith.constant 0 : index
    %17 = vector.load %arg7[%c0_15, %c0_16] : memref<1x100xf32, #tpu.memory_space<vmem>>, vector<1x100xf32>
    %18 = vector.broadcast %17 : vector<1x100xf32> to vector<8x100xf32>
    %19 = arith.addf %16, %18 : vector<8x100xf32>
    %c0_17 = arith.constant 0 : index
    %c0_18 = arith.constant 0 : index
    %20 = vector.load %arg8[%c0_17, %c0_18] : memref<8x100xf32, #tpu.memory_space<vmem>>, vector<8x100xf32>
    tpu.vector_store %arg8[%c0_17, %c0_18], %19 {strides = array<i32>} : memref<8x100xf32, #tpu.memory_space<vmem>>, vector<8x100xf32>,
    return
  }
  func.func @transform_0(%arg0: i32) -> (i32, i32) {
    %c0_i32 = arith.constant 0 : i32
    %c0_i32_0 = arith.constant 0 : i32
    return %arg0, %c0_i32 : i32, i32
  }
  func.func @transform_1(%arg0: i32) -> (i32, i32) {
    %c0_i32 = arith.constant 0 : i32
    %c0_i32_0 = arith.constant 0 : i32
    %c0_i32_1 = arith.constant 0 : i32
    return %c0_i32, %c0_i32_0 : i32, i32
  }
  func.func @transform_2(%arg0: i32) -> (i32, i32) {
    %c0_i32 = arith.constant 0 : i32
    %c0_i32_0 = arith.constant 0 : i32
    %c0_i32_1 = arith.constant 0 : i32
    return %c0_i32, %c0_i32_0 : i32, i32
  }
  func.func @transform_3(%arg0: i32) -> (i32, i32) {
    %c0_i32 = arith.constant 0 : i32
    %c0_i32_0 = arith.constant 0 : i32
    %c0_i32_1 = arith.constant 0 : i32
    return %c0_i32, %c0_i32_0 : i32, i32
  }
  func.func @transform_4(%arg0: i32) -> (i32, i32) {
    %c0_i32 = arith.constant 0 : i32
    %c0_i32_0 = arith.constant 0 : i32
    %c0_i32_1 = arith.constant 0 : i32
    return %c0_i32, %c0_i32_0 : i32, i32
  }
  func.func @transform_5(%arg0: i32) -> (i32, i32) {
    %c0_i32 = arith.constant 0 : i32
    %c0_i32_0 = arith.constant 0 : i32
    %c0_i32_1 = arith.constant 0 : i32
    return %c0_i32, %c0_i32_0 : i32, i32
  }
  func.func @transform_6(%arg0: i32) -> (i32, i32) {
    %c0_i32 = arith.constant 0 : i32
    %c0_i32_0 = arith.constant 0 : i32
    %c0_i32_1 = arith.constant 0 : i32
    return %c0_i32, %c0_i32_0 : i32, i32
  }
  func.func @transform_7(%arg0: i32) -> (i32, i32) {
    %c0_i32 = arith.constant 0 : i32
    %c0_i32_0 = arith.constant 0 : i32
    return %arg0, %c0_i32 : i32, i32
  }
}

</mosaic_0001>

<bundles_post_ra>
// kernel: regression_nn_forward.1
= control target key start
LH: loop header
LB: loop body
LE: loop exit
PB: predicated region body
PF: predicated region fallthrough
CT: control target
= control target key end

     0   :  { %vm40_vm0 = vcmask 1043456   ;;  %v471_v2 = vmov 0.0   ;;  %vm472_vm1 = vmmov 0   ;;  %vm36_vm2 = vcmask 31744   ;;  %s617_s0 = inlined_call_operand.vmem [shape: f32[8,4], index: 0, kind: input, shape index: {}]   ;;  %s618_s1 = inlined_call_operand.vmem [shape: f32[4,128], index: 1, kind: input, shape index: {}]   ;;  %s619_s2 = inlined_call_operand.vmem [shape: f32[1,128], index: 2, kind: input, shape index: {}]   ;;  %s620_s3 = inlined_call_operand.vmem [shape: f32[128,64], index: 3, kind: input, shape index: {}]   ;;  %s621_s4 = inlined_call_operand.vmem [shape: f32[1,64], index: 4, kind: input, shape index: {}]   ;;  %s622_s5 = inlined_call_operand.vmem [shape: f32[64,100], index: 5, kind: input, shape index: {}]   ;;  %s623_s6 = inlined_call_operand.vmem [shape: f32[1,100], index: 6, kind: input, shape index: {}]   ;;  %s624_s7 = inlined_call_operand.hbm [shape: f32[8,100], index: 7, kind: output, shape index: {}]  }
   0x1   :  { %v28_v0 = vld [vmem:[%s618_s1] sm:$0xf]  ;;  %348 = vmatprep.subr.mxu0 %v471_v2  ;;  %350 = vmatprep.mubr.msk.f32.mxu0 %vm472_vm1, %v471_v2  ;;  %v116_v4 = vld [vmem:[%s620_s3 + $0x8] sm:$0xff]  ;;  %v117_v5 = vld [vmem:[%s620_s3 + $0x10] sm:$0xff]  ;;  %v473_v6 = vmov 0.0|0.0  }
   0x2   :  { %v27_v1 = vld [vmem:[%s617_s0] sm:$0xff]  ;;  %349 = vmatpush3.msk.msra.mxu0 %vm40_vm0, %v28_v0  ;;  %407 = vmatprep.subr.bf16.mxu1 %v473_v6  ;;  %v118_v8 = vld [vmem:[%s620_s3 + $0x18] sm:$0xff]  ;;  %v120_v11 = vld [vmem:[%s620_s3 + $0x28] sm:$0xff] }
   0x3   :  { %v115_v3 = vld [vmem:[%s620_s3] sm:$0xff]  ;;  %351 = vmatmul.mubr.msk.f32.vlgmr.msra.gmra.mrb[0].mxu0 %vm36_vm2, %v27_v1  ;;  %385 = vmatprep.mubr.msk.f32.mxu1 %vm472_vm1, %v471_v2  ;;  %v411_v9 = vpack.c.bf16 %v118_v8, %v117_v5 }
   0x4   :  { %v408_v7 = vpack.c.bf16 %v116_v4, %v115_v3  ;;  %431 = vmatprep.subr.bf16.mxu0 %v473_v6  ;;  %v119_v10 = vld [vmem:[%s620_s3 + $0x20] sm:$0xff]  ;;  %404 = vmatprep.mubr.msk.f32.mxu0 %vm472_vm1, %v471_v2 }
   0x6   :  { %409 = vmatpush3.bf16.msra.mxu1 %v408_v7 }
   0x7   :  { %410 = vmatprep.subr.bf16.mxu1 %v473_v6 }
   0x8   :  { %12 = vsyncpa [#allocation3], 0  ;;  %v414_v12 = vpack.c.bf16 %v120_v11, %v119_v10  ;;  %v121_v13 = vld [vmem:[%s620_s3 + $0x30] sm:$0xff]  ;;  %v122_v14 = vld [vmem:[%s620_s3 + $0x38] sm:$0xff]  ;;  %vm224_vm3 = vcmask 523264   ;;  %s474_s30 = smov [#allocation2]  }
   0x9   :  { %v417_v15 = vpack.c.bf16 %v122_v14, %v121_v13  ;;  %v123_v16 = vld [vmem:[%s620_s3 + $0x40] sm:$0xff]  ;;  %v124_v17 = vld [vmem:[%s620_s3 + $0x48] sm:$0xff]  ;;  %v125_v19 = vld [vmem:[%s620_s3 + $0x50] sm:$0xff]  ;;  %s306_s8 = sshll.u32 %s474_s30, 4  ;;  %vm298_vm4 = vcmask 818176   ;;  %s307_s8 = int_to_ptr.vmem [resolvable:$true] %s306_s8 }
   0xa   :  { %412 = vmatpush3.bf16.msra.mxu1 %v411_v9  ;;  %v420_v18 = vpack.c.bf16 %v124_v17, %v123_v16  ;;  %v126_v20 = vld [vmem:[%s620_s3 + $0x58] sm:$0xff]  ;;  %v127_v22 = vld [vmem:[%s620_s3 + $0x60] sm:$0xff]  ;;  %v128_v23 = vld [vmem:[%s620_s3 + $0x68] sm:$0xff]  ;;  %p452_p1 = scmp.lt.s32.totalorder %s307_s8, %s307_s8 }
   0xb   :  { %413 = vmatprep.subr.bf16.mxu1 %v473_v6  ;;  %v423_v21 = vpack.c.bf16 %v126_v20, %v125_v19  ;;  %v426_v24 = vpack.c.bf16 %v128_v23, %v127_v22  ;;  %v129_v25 = vld [vmem:[%s620_s3 + $0x70] sm:$0xff]  ;;  %v130_v26 = vld [vmem:[%s620_s3 + $0x78] sm:$0xff]  ;;  %v209_v28 = vld [vmem:[%s622_s5] sm:$0xff] }
   0xc   :  { %v429_v27 = vpack.c.bf16 %v130_v26, %v129_v25  ;;  %v210_v29 = vld [vmem:[%s622_s5 + $0x8] sm:$0xff]  ;;  %v211_v30 = vld [vmem:[%s622_s5 + $0x10] sm:$0xff]  ;;  %v212_v32 = vld [vmem:[%s622_s5 + $0x18] sm:$0xff] }
   0xd   :  { %v432_v31 = vpack.c.bf16 %v210_v29, %v209_v28  ;;  %v435_v33 = vpack.c.bf16 %v212_v32, %v211_v30  ;;  %v213_v34 = vld [vmem:[%s622_s5 + $0x20] sm:$0xff]  ;;  %v214_v35 = vld [vmem:[%s622_s5 + $0x28] sm:$0xff]  ;;  %v215_v42 = vld [vmem:[%s622_s5 + $0x30] sm:$0xff] }
   0xe   :  { %415 = vmatpush3.bf16.msra.mxu1 %v414_v12  ;;  %v438_v36 = vpack.c.bf16 %v214_v35, %v213_v34  ;;  %v314_v37 = vld [vmem:[%s619_s2] ss:$0 sm:$0xff]  ;;  %v216_v43 = vld [vmem:[%s622_s5 + $0x38] sm:$0xff]  ;;  %s447_s5 = scalar_lea.vmem %s307_s8, 128 }
   0xf   :  { %416 = vmatprep.subr.bf16.mxu1 %v473_v6  ;;  %433 = vmatpush3.bf16.msra.mxu0 %v432_v31  ;;  %v441_v44 = vpack.c.bf16 %v216_v43, %v215_v42  ;;  %v317_v45 = vld [vmem:[%s621_s4] ss:$0 sm:$0xff]  ;;  %p448_p0 = scmp.ne.s32.totalorder %s307_s8, %s447_s5  ;;  %p453_p2 = scmp.lt.s32.totalorder %s447_s5, %s447_s5 }
  0x10   :  { %434 = vmatprep.subr.bf16.mxu0 %v473_v6  ;;  %v318_v50 = vld [vmem:[%s623_s6] ss:$0 sm:$0xff] }
  0x11   :  { %p454_p3 = por %p453_p2, %p452_p1 }
  0x12   :  { %418 = vmatpush3.bf16.msra.mxu1 %v417_v15 }
  0x13   :  { %419 = vmatprep.subr.bf16.mxu1 %v473_v6  ;;  %436 = vmatpush3.bf16.msra.mxu0 %v435_v33  ;;  %p455_p4 = pnand %p454_p3, %p448_p0 }
  0x14   :  { %437 = vmatprep.subr.bf16.mxu0 %v473_v6 }
  0x16   :  { %421 = vmatpush3.bf16.msra.mxu1 %v420_v18 }
  0x17   :  { %422 = vmatprep.subr.bf16.mxu1 %v473_v6  ;;  %439 = vmatpush3.bf16.msra.mxu0 %v438_v36 }
  0x18   :  { %440 = vmatprep.subr.bf16.mxu0 %v473_v6 }
  0x1a   :  { %424 = vmatpush3.bf16.msra.mxu1 %v423_v21 }
  0x1b   :  { %425 = vmatprep.subr.bf16.mxu1 %v473_v6  ;;  %442 = vmatpush3.bf16.msra.mxu0 %v441_v44 }
  0x1e   :  { %427 = vmatpush3.bf16.msra.mxu1 %v426_v24 }
  0x1f   :  { %428 = vmatprep.subr.bf16.mxu1 %v473_v6 }
  0x22   :  { %430 = vmatpush3.bf16.msra.mxu1 %v429_v27 }
  0xd6   :  { %v110_v38 = vpop.f32.mrb[0].mxu0 }
  0xd7   :  { %v111_v39 = vadd.f32 %v314_v37, %v110_v38  ;;  %v352_v40 = vpop.f32.mrb[1].mxu0 }
  0xd9   :  { %v114_v41 = vmax.f32 %v111_v39, 0.0 }
  0xdb   :  { %386 = vmatmul.mubr.f32.vlgmr.msra.gmra.mrb[0].mxu1 %v114_v41 }
 0x1ae   :  { %v204_v46 = vpop.f32.mrb[0].mxu1 }
 0x1af   :  { %v205_v47 = vadd.f32 %v317_v45, %v204_v46  ;;  %v387_v48 = vpop.f32.mrb[1].mxu1 }
 0x1b1   :  { %v208_v49 = vmax.f32 %v205_v47, 0.0 }
 0x1b3   :  { %405 = vmatmul.mubr.msk.f32.vlgmr.msra.gmra.mrb[2].mxu0 %vm224_vm3, %v208_v49 }
 0x286   :  { %v294_v51 = vpop.f32.mrb[2].mxu0 }
 0x287   :  { %v295_v52 = vadd.f32 %v318_v50, %v294_v51  ;;  %v406_v53 = vpop.f32.mrb[3].mxu0 }
 0x289   :  { %299 = vst.msk [vmem:[#allocation2] sm:$0xff] %vm298_vm4, %v295_v52 }
 0x28a   :  { %458 = shalt.err (!%p455_p4)
}
 0x28b   :  { %s459_s9 = scalar_lea.hbm %s624_s7, 128 }
 0x28c   :  { %p460_p5 = scmp.ne.s32.totalorder %s624_s7, %s459_s9  ;;  %p463_p6 = scmp.lt.u32.totalorder %s459_s9, %s624_s7 }
 0x28e   :  { %p465_p7 = pnand %p463_p6, %p460_p5 }
 0x290   :  { %468 = shalt.err (!%p465_p7)
}
 0x291   :  { %309 = dma.vmem_to_hbm [thread:$0]  %s307_s8, 128, %s624_s7, [#allocation3]  }
 0x292   :  { %469 = dma.done.wait [#allocation3], 128  }
 0x293   :  { %470 = vsyncadd [#allocation3], 4294967168 }
 0x294   :  { %313 = vsyncpa [#allocation3], 1 }

</bundles_post_ra>
